<compile_context>
chip_gen: v6e
topology: v6e:2x2x1
jax: 0.10.0
libtpu: 0.0.40
codegen_flags: <defaults>
</compile_context>

<pallas_src>
import jax
import jax.numpy as jnp
from jax import lax
from jax.experimental import pallas as pl
from jax.experimental.pallas import tpu as pltpu


def _make_mlp_kernel(n_chunks, tc):
    """Kernel factory: the (D, TB) tile is processed in `n_chunks` lane chunks
    of width `tc`, bounding live intermediates independently of TB."""

    def kernel(xt_ref, w1_ref, b1_ref, w2_ref, b2_ref, w3_ref, b3_ref, o_ref):
        # Weights / biases are VMEM-resident (constant index_map); hoist loads.
        w1 = w1_ref[...]
        b1 = b1_ref[...]
        w2 = w2_ref[...]
        b2 = b2_ref[...]
        w3 = w3_ref[...]
        b3 = b3_ref[...]

        def compute(j):
            # In-kernel upcast == X.float(); no-op when streaming f32.
            xt = xt_ref[:, pl.ds(j, tc)].astype(jnp.float32)          # (D, tc)
            # Layer 1: Linear + ReLU (dropout = identity in eval mode).
            h1 = jnp.dot(w1, xt, preferred_element_type=jnp.float32)
            h1 = jnp.maximum(h1 + b1, 0.0)                            # (H1, tc)
            # Layer 2: Linear + ReLU.
            h2 = jnp.dot(w2, h1, preferred_element_type=jnp.float32)
            h2 = jnp.maximum(h2 + b2, 0.0)                            # (H2, tc)
            # Layer 3 (out_features = 1): VPU multiply + sublane reduction
            # instead of a width-1 MXU matmul; lane-dense (1, tc) store.
            o_ref[:, pl.ds(j, tc)] = (
                jnp.sum(h2 * w3, axis=0, keepdims=True) + b3)

        if n_chunks == 1:
            compute(0)
        else:
            def body(c, carry):
                compute(pl.multiple_of(c * tc, 128))
                return carry
            lax.fori_loop(0, n_chunks, body, 0, unroll=True)

    return kernel


def _pick_block(batch, tb):
    """Batch-tile (lane) width: multiple of 128 whenever tiling, split into
    >= 2 tiles when large enough (v7x megacore), full batch otherwise."""
    tb = max(128, (int(tb) // 128) * 128)               # guard: multiple of 128
    if batch > tb:
        return tb
    if batch >= 256:
        # ~half the batch, rounded up to a lane multiple -> grid of 2.
        return (((batch + 1) // 2) + 127) // 128 * 128
    return batch                                         # single full-extent block


def _pick_chunk(tb_block, chunk):
    """Largest multiple of 128 <= chunk that divides tb_block (else whole tile)."""
    if tb_block <= chunk:
        return tb_block
    c = (int(chunk) // 128) * 128
    while c >= 128:
        if tb_block % c == 0:
            return c
        c -= 128
    return tb_block


def regressor_forward(x, params, *, tb=8192, chunk=1024,
                      stream_dtype=jnp.bfloat16, x_transposed=False):
    """Fused MLP forward.

    x: (B, input_dim) float -- or (input_dim, B) if x_transposed=True.
    Returns (B, 1) float32.

    stream_dtype: dtype x is streamed HBM->VMEM in.  bfloat16 halves the
      dominant DMA stream (the downcast is fused into the wrapper transpose);
      jnp.float32 gives bit-faithful X.float() numerics.
    x_transposed: pass x already in (D, B) layout (ideally already in
      stream_dtype) to skip the wrapper-side transpose pass entirely.
    """
    w1, b1, w2, b2, w3, b3 = params
    H1 = w1.shape[0]
    H2 = w2.shape[0]

    if x_transposed:
        xt = x.astype(stream_dtype)                      # (D, B)
        D, B = xt.shape
    else:
        B, D = x.shape
        # Single fused XLA pass: read x, write the transposed stream_dtype copy.
        xt = x.astype(stream_dtype).T                    # (D, B)

    TB = _pick_block(B, tb)
    Bp = ((B + TB - 1) // TB) * TB                       # pad batch to tile mult.
    if Bp != B:
        xt = jnp.pad(xt, ((0, 0), (0, Bp - B)))
    grid = (Bp // TB,)

    tc = _pick_chunk(TB, chunk)                          # compute chunk width
    n_chunks = TB // tc

    const = lambda i: (0, 0)

    flops = 2 * Bp * (D * H1 + H1 * H2 + H2)
    bytes_accessed = (
        Bp * D * xt.dtype.itemsize                       # streamed x tiles
        + Bp * 4                                         # (1, Bp) f32 output
        + sum(int(p.size) * p.dtype.itemsize for p in params))

    out = pl.pallas_call(
        _make_mlp_kernel(n_chunks, tc),
        out_shape=jax.ShapeDtypeStruct((1, Bp), jnp.float32),
        grid=grid,
        in_specs=[
            pl.BlockSpec((D, TB), lambda i: (0, i)),     # streamed x tiles
            pl.BlockSpec((H1, D), const),                # resident weights/biases
            pl.BlockSpec((H1, 1), const),
            pl.BlockSpec((H2, H1), const),
            pl.BlockSpec((H2, 1), const),
            pl.BlockSpec((H2, 1), const),
            pl.BlockSpec((1, 1), const),
        ],
        out_specs=pl.BlockSpec((1, TB), lambda i: (0, i)),
        compiler_params=pltpu.CompilerParams(
            dimension_semantics=("parallel",),           # shard tiles on v7x 2 TCs
            vmem_limit_bytes=32 << 20),                  # headroom over v5e 16 MiB
        cost_estimate=pl.CostEstimate(
            flops=flops, transcendentals=0,
            bytes_accessed=int(bytes_accessed)),
    )(xt, w1, b1, w2, b2, w3, b3)

    return out[:, :B].T                                  # (B, 1) f32


def init_params(key, input_dim=10, hidden_units_1=128, hidden_units_2=64):
    """PyTorch-like uniform fan-in init.

    Weights are stored in PyTorch's (out_features, in_features) layout (the
    kernel computes W @ x_T); biases are (out_features, 1) columns and w3 is a
    (hidden_units_2, 1) column for lane broadcasting in the final reduction.
    """
    ks = jax.random.split(key, 6)

    def lin(kw, kb, fan_in, fan_out):
        bound = 1.0 / float(fan_in) ** 0.5
        w = jax.random.uniform(kw, (fan_out, fan_in), jnp.float32, -bound, bound)
        b = jax.random.uniform(kb, (fan_out, 1), jnp.float32, -bound, bound)
        return w, b

    w1, b1 = lin(ks[0], ks[1], input_dim, hidden_units_1)
    w2, b2 = lin(ks[2], ks[3], hidden_units_1, hidden_units_2)
    w3_row, b3 = lin(ks[4], ks[5], hidden_units_2, 1)      # (1, H2)
    return (w1, b1, w2, b2, w3_row.T, b3)                  # w3 stored (H2, 1)


def reference_forward(x, params, stream_dtype=jnp.float32):
    """Pure-JAX reference (eval-mode dropout = identity). `stream_dtype`
    mirrors the kernel's HBM stream dtype (x rounded through it)."""
    x = x.astype(stream_dtype).astype(jnp.float32)
    w1, b1, w2, b2, w3, b3 = params
    h1 = jnp.maximum(x @ w1.T + b1.T, 0.0)
    h2 = jnp.maximum(h1 @ w2.T + b2.T, 0.0)
    return h2 @ w3 + b3.T


if __name__ == "__main__":
    key = jax.random.PRNGKey(0)
    k_param, k_x1, k_x2, k_x3 = jax.random.split(key, 4)

    input_dim = 10
    params = init_params(k_param, input_dim=input_dim,
                         hidden_units_1=128, hidden_units_2=64)

    # 1) Small single-tile batch, exact f32 streaming (bit-faithful X.float()).
    x_small = jax.random.normal(k_x1, (8, input_dim), dtype=jnp.float32)
    out_small = jax.block_until_ready(
        regressor_forward(x_small, params, stream_dtype=jnp.float32))
    ref_small = reference_forward(x_small, params, stream_dtype=jnp.float32)
    assert out_small.shape == (8, 1), out_small.shape
    assert jnp.allclose(out_small, ref_small, atol=1e-4, rtol=1e-4), \
        "mismatch vs reference (small batch, f32 stream)"

    # 2) Ragged batch -> 2 tiles of 256 lanes, default bf16 streaming.
    x_mid = jax.random.normal(k_x2, (300, input_dim), dtype=jnp.float32)
    out_mid = jax.block_until_ready(regressor_forward(x_mid, params))
    ref_mid = reference_forward(x_mid, params, stream_dtype=jnp.bfloat16)
    assert out_mid.shape == (300, 1), out_mid.shape
    assert jnp.allclose(out_mid, ref_mid, atol=1e-4, rtol=1e-4), \
        "mismatch vs reference (tiled batch, bf16 stream)"

    # 3) Pre-transposed (D, B) bf16 input (no wrapper pass) + multi-chunk
    #    inner loop (chunk=128 -> 3 chunks per 384-lane tile).
    x_big = jax.random.normal(k_x3, (640, input_dim), dtype=jnp.float32)
    xt_big = x_big.astype(jnp.bfloat16).T
    out_big = jax.block_until_ready(
        regressor_forward(xt_big, params, chunk=128, x_transposed=True))
    ref_big = reference_forward(x_big, params, stream_dtype=jnp.bfloat16)
    assert out_big.shape == (640, 1), out_big.shape
    assert jnp.allclose(out_big, ref_big, atol=1e-4, rtol=1e-4), \
        "mismatch vs reference (pre-transposed, chunked)"

    print("KERNEL_OK")
</pallas_src>

<mosaic_0001>
module attributes {stable_mosaic.version = 11 : i64} {
  func.func @kernel(%arg0: i32, %arg1: memref<10x8xf32, #tpu.memory_space<vmem>>, %arg2: memref<128x10xf32, #tpu.memory_space<vmem>>, %arg3: memref<128x1xf32, #tpu.memory_space<vmem>>, %arg4: memref<64x128xf32, #tpu.memory_space<vmem>>, %arg5: memref<64x1xf32, #tpu.memory_space<vmem>>, %arg6: memref<64x1xf32, #tpu.memory_space<vmem>>, %arg7: memref<1x1xf32, #tpu.memory_space<vmem>>, %arg8: memref<1x8xf32, #tpu.memory_space<vmem>>) attributes {dimension_semantics = [#tpu.dimension_semantics<parallel>], iteration_bounds = array<i64: 1>, scalar_prefetch = 0 : i64, scratch_operands = 0 : i64, tpu.core_type = #tpu.core_type<tc>, window_params = [{transform_indices = @transform_0, window_bounds = array<i64: 10, 8>}, {pipeline_mode = #tpu.pipeline_mode<synchronous>, transform_indices = @transform_1, window_bounds = array<i64: 128, 10>}, {pipeline_mode = #tpu.pipeline_mode<synchronous>, transform_indices = @transform_2, window_bounds = array<i64: 128, 1>}, {pipeline_mode = #tpu.pipeline_mode<synchronous>, transform_indices = @transform_3, window_bounds = array<i64: 64, 128>}, {pipeline_mode = #tpu.pipeline_mode<synchronous>, transform_indices = @transform_4, window_bounds = array<i64: 64, 1>}, {pipeline_mode = #tpu.pipeline_mode<synchronous>, transform_indices = @transform_5, window_bounds = array<i64: 64, 1>}, {pipeline_mode = #tpu.pipeline_mode<synchronous>, transform_indices = @transform_6, window_bounds = array<i64: 1, 1>}, {transform_indices = @transform_7, window_bounds = array<i64: 1, 8>}]} {
    %c0 = arith.constant 0 : index
    %c0_0 = arith.constant 0 : index
    %0 = vector.load %arg2[%c0, %c0_0] : memref<128x10xf32, #tpu.memory_space<vmem>>, vector<128x10xf32>
    %c0_1 = arith.constant 0 : index
    %c0_2 = arith.constant 0 : index
    %1 = vector.load %arg3[%c0_1, %c0_2] : memref<128x1xf32, #tpu.memory_space<vmem>>, vector<128x1xf32>
    %c0_3 = arith.constant 0 : index
    %c0_4 = arith.constant 0 : index
    %2 = vector.load %arg4[%c0_3, %c0_4] : memref<64x128xf32, #tpu.memory_space<vmem>>, vector<64x128xf32>
    %c0_5 = arith.constant 0 : index
    %c0_6 = arith.constant 0 : index
    %3 = vector.load %arg5[%c0_5, %c0_6] : memref<64x1xf32, #tpu.memory_space<vmem>>, vector<64x1xf32>
    %c0_7 = arith.constant 0 : index
    %c0_8 = arith.constant 0 : index
    %4 = vector.load %arg6[%c0_7, %c0_8] : memref<64x1xf32, #tpu.memory_space<vmem>>, vector<64x1xf32>
    %c0_9 = arith.constant 0 : index
    %c0_10 = arith.constant 0 : index
    %5 = vector.load %arg7[%c0_9, %c0_10] : memref<1x1xf32, #tpu.memory_space<vmem>>, vector<1x1xf32>
    %c0_11 = arith.constant 0 : index
    %c0_12 = arith.constant 0 : index
    %6 = vector.load %arg1[%c0_11, %c0_12] : memref<10x8xf32, #tpu.memory_space<vmem>>, vector<10x8xf32>
    %cst = arith.constant dense<0.000000e+00> : vector<128x8xf32>
    %7 = tpu.matmul %0, %6, %cst {dimension_numbers = #tpu.dot_dimension_numbers<[1], [0], [0], [1], [0, 0, 1, 1], [], []>} : vector<128x10xf32>, vector<10x8xf32>, vector<128x8xf32> -> vector<128x8xf32>
    %8 = vector.broadcast %1 : vector<128x1xf32> to vector<128x8xf32>
    %9 = arith.addf %7, %8 : vector<128x8xf32>
    %cst_13 = arith.constant 0.000000e+00 : f32
    %10 = vector.broadcast %cst_13 : f32 to vector<128x8xf32>
    %11 = arith.maximumf %9, %10 : vector<128x8xf32>
    %cst_14 = arith.constant dense<0.000000e+00> : vector<64x8xf32>
    %12 = tpu.matmul %2, %11, %cst_14 {dimension_numbers = #tpu.dot_dimension_numbers<[1], [0], [0], [1], [0, 0, 1, 1], [], []>} : vector<64x128xf32>, vector<128x8xf32>, vector<64x8xf32> -> vector<64x8xf32>
    %13 = vector.broadcast %3 : vector<64x1xf32> to vector<64x8xf32>
    %14 = arith.addf %12, %13 : vector<64x8xf32>
    %cst_15 = arith.constant 0.000000e+00 : f32
    %15 = vector.broadcast %cst_15 : f32 to vector<64x8xf32>
    %16 = arith.maximumf %14, %15 : vector<64x8xf32>
    %17 = vector.broadcast %4 : vector<64x1xf32> to vector<64x8xf32>
    %18 = arith.mulf %16, %17 : vector<64x8xf32>
    %cst_16 = arith.constant dense<0.000000e+00> : vector<8xf32>
    %19 = vector.multi_reduction <add>, %18, %cst_16 [0] : vector<64x8xf32> to vector<8xf32>
    %20 = vector.shape_cast %19 : vector<8xf32> to vector<1x8xf32>
    %21 = vector.broadcast %5 : vector<1x1xf32> to vector<1x8xf32>
    %22 = arith.addf %20, %21 : vector<1x8xf32>
    %c0_17 = arith.constant 0 : index
    %c0_18 = arith.constant 0 : index
    %23 = vector.load %arg8[%c0_17, %c0_18] : memref<1x8xf32, #tpu.memory_space<vmem>>, vector<1x8xf32>
    tpu.vector_store %arg8[%c0_17, %c0_18], %22 {strides = array<i32>} : memref<1x8xf32, #tpu.memory_space<vmem>>, vector<1x8xf32>,
    return
  }
  func.func @transform_0(%arg0: i32) -> (i32, i32) {
    %c0_i32 = arith.constant 0 : i32
    %c0_i32_0 = arith.constant 0 : i32
    return %c0_i32, %arg0 : i32, i32
  }
  func.func @transform_1(%arg0: i32) -> (i32, i32) {
    %c0_i32 = arith.constant 0 : i32
    %c0_i32_0 = arith.constant 0 : i32
    %c0_i32_1 = arith.constant 0 : i32
    return %c0_i32, %c0_i32_0 : i32, i32
  }
  func.func @transform_2(%arg0: i32) -> (i32, i32) {
    %c0_i32 = arith.constant 0 : i32
    %c0_i32_0 = arith.constant 0 : i32
    %c0_i32_1 = arith.constant 0 : i32
    return %c0_i32, %c0_i32_0 : i32, i32
  }
  func.func @transform_3(%arg0: i32) -> (i32, i32) {
    %c0_i32 = arith.constant 0 : i32
    %c0_i32_0 = arith.constant 0 : i32
    %c0_i32_1 = arith.constant 0 : i32
    return %c0_i32, %c0_i32_0 : i32, i32
  }
  func.func @transform_4(%arg0: i32) -> (i32, i32) {
    %c0_i32 = arith.constant 0 : i32
    %c0_i32_0 = arith.constant 0 : i32
    %c0_i32_1 = arith.constant 0 : i32
    return %c0_i32, %c0_i32_0 : i32, i32
  }
  func.func @transform_5(%arg0: i32) -> (i32, i32) {
    %c0_i32 = arith.constant 0 : i32
    %c0_i32_0 = arith.constant 0 : i32
    %c0_i32_1 = arith.constant 0 : i32
    return %c0_i32, %c0_i32_0 : i32, i32
  }
  func.func @transform_6(%arg0: i32) -> (i32, i32) {
    %c0_i32 = arith.constant 0 : i32
    %c0_i32_0 = arith.constant 0 : i32
    %c0_i32_1 = arith.constant 0 : i32
    return %c0_i32, %c0_i32_0 : i32, i32
  }
  func.func @transform_7(%arg0: i32) -> (i32, i32) {
    %c0_i32 = arith.constant 0 : i32
    %c0_i32_0 = arith.constant 0 : i32
    return %c0_i32, %arg0 : i32, i32
  }
}

</mosaic_0001>

<bundles_post_ra>
// kernel: tpu_custom_call.1
= control target key start
LH: loop header
LB: loop body
LE: loop exit
PB: predicated region body
PF: predicated region fallthrough
CT: control target
= control target key end

     0   :  { %s1084_s0 = inlined_call_operand.vmem [shape: f32[10,8], index: 0, kind: input, shape index: {}]   ;;  %s1085_s1 = inlined_call_operand.vmem [shape: f32[128,10], index: 1, kind: input, shape index: {}]   ;;  %s1086_s2 = inlined_call_operand.vmem [shape: f32[128,1], index: 2, kind: input, shape index: {}]   ;;  %s1087_s3 = inlined_call_operand.vmem [shape: f32[64,128], index: 3, kind: input, shape index: {}]   ;;  %s1088_s4 = inlined_call_operand.vmem [shape: f32[64,1], index: 4, kind: input, shape index: {}]   ;;  %s1089_s5 = inlined_call_operand.vmem [shape: f32[64,1], index: 5, kind: input, shape index: {}]   ;;  %s1090_s6 = inlined_call_operand.<no memory space> [shape: f32[1,1], index: 6, kind: input, shape index: {}]   ;;  %s1091_s7 = inlined_call_operand.hbm [shape: f32[1,8], index: 7, kind: output, shape index: {}]  }
   0x1   :  { %v12_v0 = vstv %s1090_s6 }
   0x2   :  { %13 = vst [vmem:[#allocation2] sm:$0x1] %v12_v0 }
   0x3   :  { %v87_v1 = vld [vmem:[%s1084_s0 + $0x8] sm:$0x3]  ;;  %vm217_vm0 = vcmask 1041408   ;;  %v86_v2 = vld [vmem:[%s1084_s0] sm:$0xff]  ;;  %vm168_vm1 = vcmask 80896   ;;  %v820_v5 = vmov 0  }
   0x4   :  { %v29_v3 = vld [vmem:[%s1085_s1] sm:$0xff]  ;;  %690 = vmatprep.subr.msk.mxu0 %vm217_vm0, %v87_v1  ;;  %v30_v4 = vld [vmem:[%s1085_s1 + $0x8] sm:$0xff]  ;;  %796 = vset.pattern.permute.xlu0 %v820_v5  ;;  %v31_v6 = vld [vmem:[%s1085_s1 + $0x10] sm:$0xff] }
   0x5   :  { %694 = vmatprep.mubr.msk.f32.mxu0 %vm168_vm1, %v29_v3  ;;  %691 = vmatpush3.msk.msra.mxu0 %vm217_vm0, %v87_v1  ;;  %v32_v7 = vld [vmem:[%s1085_s1 + $0x18] sm:$0xff]  ;;  %v58_v9 = vld [vmem:[%s1086_s2 + $0x68] sm:$0xff]  ;;  %v33_v10 = vld [vmem:[%s1085_s1 + $0x20] sm:$0xff] }
   0x6   :  { %692 = vmatprep.subr.mxu0 %v86_v2  ;;  %797 = vset.pattern.permute.xlu1 %v820_v5  ;;  %v60_v8 = vld [vmem:[%s1086_s2 + $0x78] sm:$0xff]  ;;  %v59_v11 = vld [vmem:[%s1086_s2 + $0x70] sm:$0xff]  ;;  %v57_v12 = vld [vmem:[%s1086_s2 + $0x60] sm:$0xff] }
   0x7   :  { %693 = vmatpush3.msra.mxu0 %v86_v2  ;;  %165 = vperm.xlu0 %796, %v60_v8   ;;  %v34_v13 = vld [vmem:[%s1085_s1 + $0x28] sm:$0xff]  ;;  %v35_v14 = vld [vmem:[%s1085_s1 + $0x30] sm:$0xff]  ;;  %v56_v15 = vld [vmem:[%s1086_s2 + $0x58] sm:$0xff] }
   0x8   :  { %695 = vmatmul.mubr.msk.f32.vlgmr.msra.gmra.mxu0 %vm168_vm1, %v30_v4  ;;  %155 = vperm.xlu1 %797, %v58_v9   ;;  %v55_v16 = vld [vmem:[%s1086_s2 + $0x50] sm:$0xff]  ;;  %v36_v17 = vld [vmem:[%s1085_s1 + $0x38] sm:$0xff]  ;;  %v37_v18 = vld [vmem:[%s1085_s1 + $0x40] sm:$0xff] }
   0x9   :  { %697 = vmatprep.mubr.msk.f32.mxu0 %vm168_vm1, %v31_v6  ;;  %v54_v19 = vld [vmem:[%s1086_s2 + $0x48] sm:$0xff]  ;;  %v53_v20 = vld [vmem:[%s1086_s2 + $0x40] sm:$0xff] }
   0xb   :  { %160 = vperm.xlu0 %796, %v59_v11  }
   0xc   :  { %698 = vmatmul.mubr.msk.f32.gmra.mxu0 %vm168_vm1, %v32_v7  ;;  %150 = vperm.xlu1 %797, %v57_v12  }
   0xd   :  { %700 = vmatprep.mubr.msk.f32.mxu0 %vm168_vm1, %v33_v10 }
   0xf   :  { %145 = vperm.xlu0 %796, %v56_v15  }
  0x10   :  { %701 = vmatmul.mubr.msk.f32.gmra.mxu0 %vm168_vm1, %v34_v13  ;;  %140 = vperm.xlu1 %797, %v55_v16  }
  0x11   :  { %703 = vmatprep.mubr.msk.f32.mxu0 %vm168_vm1, %v35_v14 }
  0x14   :  { %704 = vmatmul.mubr.msk.f32.gmra.mxu0 %vm168_vm1, %v36_v17 }
  0x15   :  { %14 = vsyncpa [#allocation4], 0  ;;  %706 = vmatprep.mubr.msk.f32.mxu0 %vm168_vm1, %v37_v18  ;;  %v38_v21 = vld [vmem:[%s1085_s1 + $0x48] sm:$0xff]  ;;  %v39_v22 = vld [vmem:[%s1085_s1 + $0x50] sm:$0xff]  ;;  %135 = vperm.xlu0 %796, %v54_v19   ;;  %vm583_vm2 = vcmask 64512   ;;  %vm615_vm3 = vcmask 57344  }
  0x16   :  { %130 = vperm.xlu1 %797, %v53_v20   ;;  %v52_v23 = vld [vmem:[%s1086_s2 + $0x38] sm:$0xff]  ;;  %v51_v24 = vld [vmem:[%s1086_s2 + $0x30] sm:$0xff]  ;;  %v41_v26 = vld [vmem:[%s1085_s1 + $0x60] sm:$0xff] }
  0x17   :  { %v40_v25 = vld [vmem:[%s1085_s1 + $0x58] sm:$0xff]  ;;  %v50_v27 = vld [vmem:[%s1086_s2 + $0x28] sm:$0xff]  ;;  %v49_v28 = vld [vmem:[%s1086_s2 + $0x20] sm:$0xff] }
  0x18   :  { %707 = vmatmul.mubr.msk.f32.gmra.mxu0 %vm168_vm1, %v38_v21  ;;  %v42_v29 = vld [vmem:[%s1085_s1 + $0x68] sm:$0xff]  ;;  %v43_v30 = vld [vmem:[%s1085_s1 + $0x70] sm:$0xff]  ;;  %v48_v31 = vld [vmem:[%s1086_s2 + $0x18] sm:$0xff] }
  0x19   :  { %709 = vmatprep.mubr.msk.f32.mxu0 %vm168_vm1, %v39_v22  ;;  %125 = vperm.xlu0 %796, %v52_v23   ;;  %v47_v32 = vld [vmem:[%s1086_s2 + $0x10] sm:$0xff]  ;;  %v44_v33 = vld [vmem:[%s1085_s1 + $0x78] sm:$0xff]  ;;  %v46_v34 = vld [vmem:[%s1086_s2 + $0x8] sm:$0xff] }
  0x1a   :  { %120 = vperm.xlu1 %797, %v51_v24   ;;  %v45_v35 = vld [vmem:[%s1086_s2] sm:$0xff]  ;;  %v70_v37 = vld [vmem:[%s1088_s4 + $0x8] sm:$0xff]  ;;  %v71_v38 = vld [vmem:[%s1088_s4 + $0x10] sm:$0xff] }
  0x1b   :  { %v69_v36 = vld [vmem:[%s1088_s4] sm:$0xff]  ;;  %v72_v39 = vld [vmem:[%s1088_s4 + $0x18] sm:$0xff]  ;;  %v78_v41 = vld [vmem:[%s1089_s5 + $0x8] sm:$0xff] }
  0x1c   :  { %710 = vmatmul.mubr.msk.f32.gmra.mxu0 %vm168_vm1, %v40_v25  ;;  %v77_v40 = vld [vmem:[%s1089_s5] sm:$0xff]  ;;  %v79_v43 = vld [vmem:[%s1089_s5 + $0x10] sm:$0xff]  ;;  %v74_v44 = vld [vmem:[%s1088_s4 + $0x28] sm:$0xff] }
  0x1d   :  { %712 = vmatprep.mubr.msk.f32.mxu0 %vm168_vm1, %v41_v26  ;;  %115 = vperm.xlu0 %796, %v50_v27   ;;  %v73_v42 = vld [vmem:[%s1088_s4 + $0x20] sm:$0xff]  ;;  %v80_v45 = vld [vmem:[%s1089_s5 + $0x18] sm:$0xff]  ;;  %v75_v46 = vld [vmem:[%s1088_s4 + $0x30] sm:$0xff] }
  0x1e   :  { %110 = vperm.xlu1 %797, %v49_v28   ;;  %v81_v47 = vld [vmem:[%s1089_s5 + $0x20] sm:$0xff]  ;;  %v76_v48 = vld [vmem:[%s1088_s4 + $0x38] sm:$0xff]  ;;  %v82_v49 = vld [vmem:[%s1089_s5 + $0x28] sm:$0xff] }
  0x1f   :  { %v83_v50 = vld [vmem:[%s1089_s5 + $0x30] sm:$0xff]  ;;  %v84_v51 = vld [vmem:[%s1089_s5 + $0x38] sm:$0xff]  ;;  %v85_v52 = vld [vmem:[#allocation2] sm:$0x1] }
  0x20   :  { %713 = vmatmul.mubr.msk.f32.gmra.mxu0 %vm168_vm1, %v42_v29  ;;  %v61_v53 = vld [vmem:[%s1087_s3] sm:$0xff]  ;;  %v63_v54 = vld [vmem:[%s1087_s3 + $0x10] sm:$0xff] }
  0x21   :  { %715 = vmatprep.mubr.msk.f32.mxu0 %vm168_vm1, %v43_v30  ;;  %105 = vperm.xlu0 %796, %v48_v31  }
  0x22   :  { %100 = vperm.xlu1 %797, %v47_v32   ;;  %753 = vmatprep.mubr.f32.mxu1 %v63_v54 }
  0x24   :  { %716 = vmatmul.mubr.msk.f32.gmra.mxu0 %vm168_vm1, %v44_v33 }
  0x25   :  { %95 = vperm.xlu0 %796, %v46_v34   ;;  %750 = vmatprep.mubr.f32.mxu0 %v61_v53 }
  0x26   :  { %90 = vperm.xlu1 %797, %v45_v35  }
  0x29   :  { %384 = vperm.xlu0 %796, %v69_v36  }
  0x2a   :  { %389 = vperm.xlu1 %797, %v70_v37  }
  0x2d   :  { %394 = vperm.xlu0 %796, %v71_v38  }
  0x2e   :  { %399 = vperm.xlu1 %797, %v72_v39  }
  0x31   :  { %537 = vperm.xlu0 %796, %v77_v40  }
  0x32   :  { %542 = vperm.xlu1 %797, %v78_v41  }
  0x35   :  { %404 = vperm.xlu0 %796, %v73_v42  }
  0x36   :  { %547 = vperm.xlu1 %797, %v79_v43  }
  0x39   :  { %409 = vperm.xlu0 %796, %v74_v44  }
  0x3a   :  { %552 = vperm.xlu1 %797, %v80_v45  }
  0x3d   :  { %414 = vperm.xlu0 %796, %v75_v46  }
  0x3e   :  { %557 = vperm.xlu1 %797, %v81_v47  }
  0x41   :  { %419 = vperm.xlu0 %796, %v76_v48  }
  0x42   :  { %562 = vperm.xlu1 %797, %v82_v49  }
  0x45   :  { %567 = vperm.xlu0 %796, %v83_v50  }
  0x46   :  { %572 = vperm.xlu1 %797, %v84_v51  }
  0x49   :  { %607 = vperm.xlu0 %796, %v85_v52  }
  0x82   :  { %v166_v61 = vpop.permute.xlu0 %165 }
  0x83   :  { %v156_v63 = vpop.permute.xlu1 %155 }
  0x86   :  { %v161_v2 = vpop.permute.xlu0 %160 }
  0x87   :  { %v151_v4 = vpop.permute.xlu1 %150 }
  0x8a   :  { %v146_v7 = vpop.permute.xlu0 %145 }
  0x8b   :  { %v141_v9 = vpop.permute.xlu1 %140 }
  0x90   :  { %v136_v13 = vpop.permute.xlu0 %135 }
  0x91   :  { %v131_v18 = vpop.permute.xlu1 %130 }
  0x94   :  { %v126_v23 = vpop.permute.xlu0 %125 }
  0x95   :  { %v121_v26 = vpop.permute.xlu1 %120 }
  0x98   :  { %v116_v31 = vpop.permute.xlu0 %115 }
  0x99   :  { %v111_v34 = vpop.permute.xlu1 %110 }
  0x9c   :  { %v106_v39 = vpop.permute.xlu0 %105 }
  0x9d   :  { %v101_v42 = vpop.permute.xlu1 %100 }
  0xa0   :  { %v96_v47 = vpop.permute.xlu0 %95 }
  0xa1   :  { %v91_v50 = vpop.permute.xlu1 %90 }
  0xc8   :  { %v1037_v55 = vpop.f32.mrf.mxu0 }
  0xc9   :  { %v293_v48 = vadd.f32 %v1037_v55, %v96_v47  ;;  %v62_v55 = vld [vmem:[%s1087_s3 + $0x8] sm:$0xff] }
  0xca   :  { %v1039_v56 = vpop.f32.mrf.mxu0 }
  0xcb   :  { %v288_v51 = vadd.f32 %v1039_v56, %v91_v50  ;;  %v367_v53 = vmax.f32 %v293_v48, 0.0  ;;  %v64_v56 = vld [vmem:[%s1087_s3 + $0x18] sm:$0xff] }
  0xcc   :  { %v1041_v57 = vpop.f32.mrf.mxu0 }
  0xcd   :  { %v303_v43 = vadd.f32 %v1041_v57, %v106_v39  ;;  %v366_v54 = vmax.f32 %v288_v51, 0.0  ;;  %v65_v57 = vld [vmem:[%s1087_s3 + $0x20] sm:$0xff] }
  0xce   :  { %v1043_v58 = vpop.f32.mrf.mxu0 }
  0xcf   :  { %v298_v45 = vadd.f32 %v1043_v58, %v101_v42  ;;  %v369_v49 = vmax.f32 %v303_v43, 0.0  ;;  %v66_v58 = vld [vmem:[%s1087_s3 + $0x28] sm:$0xff] }
  0xd0   :  { %v1045_v59 = vpop.f32.mrf.mxu0 }
  0xd1   :  { %v313_v37 = vadd.f32 %v1045_v59, %v116_v31  ;;  %v368_v52 = vmax.f32 %v298_v45, 0.0  ;;  %v67_v59 = vld [vmem:[%s1087_s3 + $0x30] sm:$0xff] }
  0xd2   :  { %v1047_v60 = vpop.f32.mrf.mxu0 }
  0xd3   :  { %v308_v40 = vadd.f32 %v1047_v60, %v111_v34  ;;  %v371_v44 = vmax.f32 %v313_v37, 0.0  ;;  %v68_v60 = vld [vmem:[%s1087_s3 + $0x38] sm:$0xff]  ;;  %s821_s3 = smov [#allocation3]  }
  0xd4   :  { %v705_v62 = vpop.f32.mrf.mxu0  ;;  %s623_s0 = sshll.u32 %s821_s3, 4  ;;  %s624_s0 = int_to_ptr.vmem [resolvable:$true] %s623_s0 }
  0xd5   :  { %v323_v32 = vadd.f32 %v705_v62, %v126_v23  ;;  %v370_v46 = vmax.f32 %v308_v40, 0.0  ;;  %v390_v62 = vpop.permute.xlu1 %389  ;;  %s798_s12 = scalar_lea.vmem %s624_s0, 16  ;;  %s802_s13 = scalar_lea.vmem %s624_s0, 32 }
  0xd6   :  { %v317_v0 = vpop.f32.mrf.mxu0  ;;  %p799_p0 = scmp.ne.s32.totalorder %s624_s0, %s798_s12  ;;  %p803_p1 = scmp.lt.s32.totalorder %s624_s0, %s624_s0 }
  0xd7   :  { %v318_v35 = vadd.f32 %v317_v0, %v121_v26  ;;  %v373_v38 = vmax.f32 %v323_v32, 0.0  ;;  %p804_p2 = scmp.lt.s32.totalorder %s802_s13, %s798_s12 }
  0xd8   :  { %v708_v1 = vpop.f32.mrf.mxu0 }
  0xd9   :  { %v333_v27 = vadd.f32 %v708_v1, %v136_v13  ;;  %v372_v41 = vmax.f32 %v318_v35, 0.0  ;;  %v400_v0 = vpop.permute.xlu1 %399  ;;  %p805_p3 = por %p804_p2, %p803_p1 }
  0xda   :  { %v327_v3 = vpop.f32.mrf.mxu0 }
  0xdb   :  { %v328_v29 = vadd.f32 %v327_v3, %v131_v18  ;;  %v375_v33 = vmax.f32 %v333_v27, 0.0  ;;  %p806_p4 = pnand %p805_p3, %p799_p0 }
  0xdc   :  { %v711_v5 = vpop.f32.mrf.mxu0 }
  0xdd   :  { %v343_v21 = vadd.f32 %v711_v5, %v146_v7  ;;  %v374_v36 = vmax.f32 %v328_v29, 0.0 }
  0xde   :  { %v337_v6 = vpop.f32.mrf.mxu0 }
  0xdf   :  { %v338_v24 = vadd.f32 %v337_v6, %v141_v9  ;;  %v377_v28 = vmax.f32 %v343_v21, 0.0 }
  0xe0   :  { %v714_v8 = vpop.f32.mrf.mxu0 }
  0xe1   :  { %v353_v15 = vadd.f32 %v714_v8, %v156_v63  ;;  %v376_v30 = vmax.f32 %v338_v24, 0.0 }
  0xe2   :  { %v347_v10 = vpop.f32.mrf.mxu0 }
  0xe3   :  { %v348_v19 = vadd.f32 %v347_v10, %v151_v4  ;;  %v379_v22 = vmax.f32 %v353_v15, 0.0 }
  0xe4   :  { %v717_v11 = vpop.f32.mrf.mxu0 }
  0xe5   :  { %v363_v12 = vadd.f32 %v717_v11, %v166_v61  ;;  %v378_v25 = vmax.f32 %v348_v19, 0.0  ;;  %v385_v61 = vpop.permute.xlu0 %384 }
  0xe6   :  { %v357_v14 = vpop.f32.mrf.mxu0 }
  0xe7   :  { %v381_v16 = vmax.f32 %v363_v12, 0.0  ;;  %v358_v17 = vadd.f32 %v357_v14, %v161_v2  ;;  %v543_v2 = vpop.permute.xlu1 %542 }
  0xe9   :  { %v380_v20 = vmax.f32 %v358_v17, 0.0  ;;  %718 = vmatprep.subr.mxu0 %v381_v16  ;;  %762 = vmatprep.subr.mxu1 %v381_v16  ;;  %v395_v63 = vpop.permute.xlu0 %394 }
  0xea   :  { %719 = vmatpush3.msra.mxu0 %v381_v16  ;;  %778 = vmatpush3.msra.mxu1 %v381_v16 }
  0xeb   :  { %720 = vmatprep.subr.mxu0 %v380_v20  ;;  %763 = vmatprep.subr.mxu1 %v380_v20  ;;  %v548_v4 = vpop.permute.xlu1 %547 }
  0xec   :  { %721 = vmatpush3.msra.mxu0 %v380_v20  ;;  %779 = vmatpush3.msra.mxu1 %v380_v20 }
  0xed   :  { %722 = vmatprep.subr.mxu0 %v379_v22  ;;  %764 = vmatprep.subr.mxu1 %v379_v22  ;;  %v538_v1 = vpop.permute.xlu0 %537 }
  0xee   :  { %723 = vmatpush3.msra.mxu0 %v379_v22  ;;  %780 = vmatpush3.msra.mxu1 %v379_v22 }
  0xef   :  { %724 = vmatprep.subr.mxu0 %v378_v25  ;;  %765 = vmatprep.subr.mxu1 %v378_v25  ;;  %v553_v6 = vpop.permute.xlu1 %552 }
  0xf0   :  { %725 = vmatpush3.msra.mxu0 %v378_v25  ;;  %781 = vmatpush3.msra.mxu1 %v378_v25 }
  0xf1   :  { %726 = vmatprep.subr.mxu0 %v377_v28  ;;  %766 = vmatprep.subr.mxu1 %v377_v28  ;;  %v405_v3 = vpop.permute.xlu0 %404 }
  0xf2   :  { %727 = vmatpush3.msra.mxu0 %v377_v28  ;;  %782 = vmatpush3.msra.mxu1 %v377_v28 }
  0xf3   :  { %728 = vmatprep.subr.mxu0 %v376_v30  ;;  %767 = vmatprep.subr.mxu1 %v376_v30  ;;  %v558_v17 = vpop.permute.xlu1 %557 }
  0xf4   :  { %729 = vmatpush3.msra.mxu0 %v376_v30  ;;  %783 = vmatpush3.msra.mxu1 %v376_v30 }
  0xf5   :  { %730 = vmatprep.subr.mxu0 %v375_v33  ;;  %768 = vmatprep.subr.mxu1 %v375_v33  ;;  %v410_v5 = vpop.permute.xlu0 %409 }
  0xf6   :  { %731 = vmatpush3.msra.mxu0 %v375_v33  ;;  %784 = vmatpush3.msra.mxu1 %v375_v33 }
  0xf7   :  { %732 = vmatprep.subr.mxu0 %v374_v36  ;;  %769 = vmatprep.subr.mxu1 %v374_v36  ;;  %v563_v35 = vpop.permute.xlu1 %562 }
  0xf8   :  { %733 = vmatpush3.msra.mxu0 %v374_v36  ;;  %785 = vmatpush3.msra.mxu1 %v374_v36 }
  0xf9   :  { %734 = vmatprep.subr.mxu0 %v373_v38  ;;  %770 = vmatprep.subr.mxu1 %v373_v38  ;;  %v415_v9 = vpop.permute.xlu0 %414 }
  0xfa   :  { %735 = vmatpush3.msra.mxu0 %v373_v38  ;;  %786 = vmatpush3.msra.mxu1 %v373_v38 }
  0xfb   :  { %736 = vmatprep.subr.mxu0 %v372_v41  ;;  %771 = vmatprep.subr.mxu1 %v372_v41  ;;  %v573_v51 = vpop.permute.xlu1 %572 }
  0xfc   :  { %737 = vmatpush3.msra.mxu0 %v372_v41  ;;  %787 = vmatpush3.msra.mxu1 %v372_v41 }
  0xfd   :  { %738 = vmatprep.subr.mxu0 %v371_v44  ;;  %772 = vmatprep.subr.mxu1 %v371_v44  ;;  %v420_v27 = vpop.permute.xlu0 %419 }
  0xfe   :  { %739 = vmatpush3.msra.mxu0 %v371_v44  ;;  %788 = vmatpush3.msra.mxu1 %v371_v44 }
  0xff   :  { %740 = vmatprep.subr.mxu0 %v370_v46  ;;  %773 = vmatprep.subr.mxu1 %v370_v46 }
 0x100   :  { %741 = vmatpush3.msra.mxu0 %v370_v46  ;;  %789 = vmatpush3.msra.mxu1 %v370_v46 }
 0x101   :  { %742 = vmatprep.subr.mxu0 %v369_v49  ;;  %774 = vmatprep.subr.mxu1 %v369_v49  ;;  %v568_v47 = vpop.permute.xlu0 %567 }
 0x102   :  { %743 = vmatpush3.msra.mxu0 %v369_v49  ;;  %790 = vmatpush3.msra.mxu1 %v369_v49 }
 0x103   :  { %744 = vmatprep.subr.mxu0 %v368_v52  ;;  %775 = vmatprep.subr.mxu1 %v368_v52 }
 0x104   :  { %745 = vmatpush3.msra.mxu0 %v368_v52  ;;  %791 = vmatpush3.msra.mxu1 %v368_v52 }
 0x105   :  { %746 = vmatprep.subr.mxu0 %v367_v53  ;;  %776 = vmatprep.subr.mxu1 %v367_v53 }
 0x106   :  { %747 = vmatpush3.msra.mxu0 %v367_v53  ;;  %792 = vmatpush3.msra.mxu1 %v367_v53 }
 0x107   :  { %748 = vmatprep.subr.mxu0 %v366_v54  ;;  %777 = vmatprep.subr.mxu1 %v366_v54 }
 0x108   :  { %749 = vmatpush3.msra.mxu0 %v366_v54  ;;  %793 = vmatpush3.msra.mxu1 %v366_v54 }
 0x109   :  { %751 = vmatmul.mubr.f32.vlgmr.msra.gmra.mxu0 %v62_v55  ;;  %754 = vmatmul.mubr.f32.vlgmr.msra.gmra.mxu1 %v64_v56 }
 0x10a   :  { %756 = vmatprep.mubr.f32.mxu1 %v65_v57 }
 0x10d   :  { %757 = vmatmul.mubr.f32.gmra.mxu1 %v66_v58 }
 0x10e   :  { %759 = vmatprep.mubr.f32.mxu1 %v67_v59  ;;  %v610_v59 = vlaneseq }
 0x111   :  { %760 = vmatmul.mubr.f32.gmra.mxu1 %v68_v60 }
 0x1c9   :  { %v752_v7 = vpop.f32.mrf.mxu0  ;;  %v755_v8 = vpop.f32.mrf.mxu1 }
 0x1ca   :  { %v494_v10 = vadd.f32 %v752_v7, %v390_v62  ;;  %v504_v11 = vadd.f32 %v755_v8, %v400_v0  ;;  %v611_v62 = vshrl.u32 %v610_v59, 7 }
 0x1cb   :  { %v488_v12 = vpop.f32.mrf.mxu0  ;;  %v498_v13 = vpop.f32.mrf.mxu1 }
 0x1cc   :  { %v528_v14 = vmax.f32 %v494_v10, 0.0  ;;  %v489_v15 = vadd.f32 %v488_v12, %v385_v61  ;;  %v499_v16 = vadd.f32 %v498_v13, %v395_v63  ;;  %v530_v18 = vmax.f32 %v504_v11, 0.0 }
 0x1cd   :  { %v758_v19 = vpop.f32.mrf.mxu1 }
 0x1ce   :  { %v576_v20 = vmul.f32 %v543_v2, %v528_v14  ;;  %v527_v21 = vmax.f32 %v489_v15, 0.0  ;;  %v529_v22 = vmax.f32 %v499_v16, 0.0  ;;  %v514_v23 = vadd.f32 %v758_v19, %v410_v5 }
 0x1cf   :  { %v508_v24 = vpop.f32.mrf.mxu1  ;;  %v578_v28 = vmul.f32 %v553_v6, %v530_v18 }
 0x1d0   :  { %v575_v25 = vmul.f32 %v538_v1, %v527_v21  ;;  %v577_v26 = vmul.f32 %v548_v4, %v529_v22  ;;  %v509_v29 = vadd.f32 %v508_v24, %v405_v3  ;;  %v585_v31 = vsel %vm583_vm2, %v576_v20, 0.0  ;;  %v608_v3 = vpop.permute.xlu0 %607 }
 0x1d1   :  { %v761_v30 = vpop.f32.mrf.mxu1  ;;  %v532_v33 = vmax.f32 %v514_v23, 0.0  ;;  %v589_v43 = vsel %vm583_vm2, %v578_v28, 0.0  ;;  %v612_v1 = vsub.s32 0, %v611_v62 }
 0x1d2   :  { %v584_v32 = vsel %vm583_vm2, %v575_v25, 0.0  ;;  %v524_v34 = vadd.f32 %v761_v30, %v420_v27  ;;  %v531_v37 = vmax.f32 %v509_v29, 0.0  ;;  %v587_v39 = vsel %vm583_vm2, %v577_v26, 0.0 }
 0x1d3   :  { %v586_v36 = vadd.f32 %v585_v31, %v584_v32  ;;  %v518_v38 = vpop.f32.mrf.mxu1  ;;  %v580_v44 = vmul.f32 %v563_v35, %v532_v33  ;;  %v613_v5 = vrot.slane %v608_v3, %v612_v1 }
 0x1d4   :  { %v519_v40 = vadd.f32 %v518_v38, %v415_v9  ;;  %v579_v42 = vmul.f32 %v558_v17, %v531_v37  ;;  %v534_v45 = vmax.f32 %v524_v34, 0.0 }
 0x1d5   :  { %v588_v41 = vadd.f32 %v587_v39, %v586_v36  ;;  %v593_v53 = vsel %vm583_vm2, %v580_v44, 0.0 }
 0x1d6   :  { %v533_v46 = vmax.f32 %v519_v40, 0.0  ;;  %v591_v49 = vsel %vm583_vm2, %v579_v42, 0.0  ;;  %v582_v54 = vmul.f32 %v573_v51, %v534_v45 }
 0x1d7   :  { %v590_v48 = vadd.f32 %v589_v43, %v588_v41 }
 0x1d8   :  { %v581_v50 = vmul.f32 %v568_v47, %v533_v46  ;;  %v597_v58 = vsel %vm583_vm2, %v582_v54, 0.0 }
 0x1d9   :  { %v592_v52 = vadd.f32 %v591_v49, %v590_v48 }
 0x1da   :  { %v595_v56 = vsel %vm583_vm2, %v581_v50, 0.0 }
 0x1db   :  { %v594_v55 = vadd.f32 %v593_v53, %v592_v52 }
 0x1dd   :  { %v596_v57 = vadd.f32 %v595_v56, %v594_v55 }
 0x1df   :  { %v598_v60 = vadd.f32 %v597_v58, %v596_v57 }
 0x1e1   :  { %v599_v61 = vrot.slane %v598_v60, 4 }
 0x1e3   :  { %v600_v63 = vadd.f32 %v599_v61, %v598_v60 }
 0x1e5   :  { %v601_v0 = vrot.slane %v600_v63, 2 }
 0x1e7   :  { %v602_v2 = vadd.f32 %v601_v0, %v600_v63 }
 0x1e9   :  { %v603_v4 = vrot.slane %v602_v2, 1 }
 0x1eb   :  { %v604_v6 = vadd.f32 %v603_v4, %v602_v2 }
 0x1ed   :  { %v614_v7 = vadd.f32 %v613_v5, %v604_v6 }
 0x1ef   :  { %616 = vst.msk [vmem:[#allocation3] sm:$0x1] %vm615_vm3, %v614_v7 }
 0x1f0   :  { %809 = shalt.err (!%p806_p4)
}
 0x1f1   :  { %626 = dma.vmem_to_hbm [thread:$0]  %s624_s0, 16, %s1091_s7, [#allocation4]  }
 0x1f2   :  { %818 = dma.done.wait [#allocation4], 16  }
 0x1f3   :  { %819 = vsyncadd [#allocation4], 4294967280 }
 0x1f4   :  { %630 = vsyncpa [#allocation4], 1 }

</bundles_post_ra>
